<compile_context>
chip_gen: v6e
topology: v6e:2x2x1
jax: 0.10.0
libtpu: 0.0.40
codegen_flags: <defaults>
</compile_context>

<pallas_src>
import math
import functools

import jax
import jax.numpy as jnp
from jax import lax
from jax.experimental import pallas as pl
from jax.experimental.pallas import tpu as pltpu


# ------------------------------- fused kernel --------------------------------
def make_error_kernel(in_dim, h_dim, n_blocks, out_norm):
    """Build the fused MLP kernel for a static (in_dim, h_dim, n_blocks, out_norm)."""
    eps = 1e-5

    # Row offsets of each Linear weight inside the packed weight slab.
    in_dims = [in_dim] + [h_dim] * (n_blocks - 1)          # block linears
    w_offs = [0]
    for d in in_dims + [h_dim]:                             # + head linear rows
        w_offs.append(w_offs[-1] + d)

    def kernel(x_ref, w_ref, v_ref, out_ref):
        y = x_ref[...]                                      # [B, in_dim]

        # n_blocks x (Linear -> BatchNorm1d(eval) -> PReLU), fully unrolled.
        for k in range(n_blocks):
            w = w_ref[w_offs[k]:w_offs[k + 1], :]           # [din, h]
            r0 = 6 * k
            b  = v_ref[r0 + 0:r0 + 1, :]                    # bias
            g  = v_ref[r0 + 1:r0 + 2, :]                    # BN gamma
            be = v_ref[r0 + 2:r0 + 3, :]                    # BN beta
            m  = v_ref[r0 + 3:r0 + 4, :]                    # BN running_mean
            v  = v_ref[r0 + 4:r0 + 5, :]                    # BN running_var
            a  = v_ref[r0 + 5:r0 + 6, :]                    # PReLU alpha (broadcast row)

            y = jnp.dot(y, w, preferred_element_type=jnp.float32) + b
            y = (y - m) * (g * lax.rsqrt(v + eps)) + be     # BatchNorm1d (eval)
            y = jnp.where(y >= 0, y, a * y)                 # PReLU

        # Head: Linear(h, 1).  The head weight is zero-padded to [h, h] with the
        # real weights in column 0; the bias is a broadcast row, only column 0
        # of the result is kept.
        w_head = w_ref[w_offs[n_blocks]:w_offs[n_blocks + 1], :]
        b_head = v_ref[6 * n_blocks:6 * n_blocks + 1, :]
        y = jnp.dot(y, w_head, preferred_element_type=jnp.float32) + b_head

        if out_norm:
            sig = v_ref[6 * n_blocks + 1:6 * n_blocks + 2, :]
            y = jnp.tanh(y) * sig

        out_ref[...] = y[:, 0:1]

    return kernel


def error_pallas(x, w_slab, v_slab, *, in_dim, h_dim, n_blocks, out_norm):
    B = x.shape[0]
    kernel = make_error_kernel(in_dim, h_dim, n_blocks, out_norm)
    return pl.pallas_call(
        kernel,
        out_shape=jax.ShapeDtypeStruct((B, 1), jnp.float32),
        in_specs=[pl.BlockSpec(memory_space=pltpu.MemorySpace.VMEM)] * 3,
        out_specs=pl.BlockSpec(memory_space=pltpu.MemorySpace.VMEM),
    )(x, w_slab, v_slab)


@functools.partial(jax.jit, static_argnames=("in_dim", "h_dim", "n_blocks", "out_norm"))
def error_forward(x, w_slab, v_slab, *, in_dim, h_dim, n_blocks, out_norm=False):
    y = error_pallas(x, w_slab, v_slab, in_dim=in_dim, h_dim=h_dim,
                     n_blocks=n_blocks, out_norm=out_norm)
    # torch .squeeze(dim=0): only squeezes when the leading dim is 1.
    return y[0] if y.shape[0] == 1 else y


# --------------------------- parameter construction ---------------------------
def init_params(key, in_dim, h_dim=16, mlp_layer=1, sigmaB=0.02):
    """Raw parameters mirroring the PyTorch module (eval-mode BN buffers included)."""
    n_blocks = 1 + mlp_layer
    keys = jax.random.split(key, 6 * n_blocks + 2)

    def u(k, shape, bound):
        return jax.random.uniform(k, shape, jnp.float32, -bound, bound)

    p = {'W': [], 'b': [], 'gamma': [], 'beta': [], 'mean': [], 'var': [], 'alpha': []}
    dims = [in_dim] + [h_dim] * mlp_layer
    ki = 0
    for din in dims:
        bound = 1.0 / math.sqrt(din)
        p['W'].append(u(keys[ki], (din, h_dim), bound)); ki += 1
        p['b'].append(u(keys[ki], (h_dim,), bound)); ki += 1
        # BatchNorm1d affine + running stats (randomized to exercise the math)
        p['gamma'].append(1.0 + 0.1 * jax.random.normal(keys[ki], (h_dim,), jnp.float32)); ki += 1
        p['beta'].append(0.1 * jax.random.normal(keys[ki], (h_dim,), jnp.float32)); ki += 1
        p['mean'].append(0.1 * jax.random.normal(keys[ki], (h_dim,), jnp.float32)); ki += 1
        p['var'].append(jax.random.uniform(keys[ki], (h_dim,), jnp.float32, 0.5, 1.5)); ki += 1
        p['alpha'].append(jnp.float32(0.25))                # PReLU default init
    bound = 1.0 / math.sqrt(h_dim)
    p['W_head'] = u(keys[ki], (h_dim, 1), bound); ki += 1
    p['b_head'] = u(keys[ki], (), bound); ki += 1
    p['sigmaB'] = jnp.float32(sigmaB)
    return p


def pack_params(p, h_dim, out_norm):
    """Pack all parameters into two slabs (one weight slab, one row-vector slab)."""
    n_blocks = len(p['W'])
    # Weight slab: block weights stacked row-wise, head weight zero-padded to [h, h].
    w_head_pad = jnp.zeros((h_dim, h_dim), jnp.float32).at[:, 0:1].set(p['W_head'])
    w_slab = jnp.concatenate(list(p['W']) + [w_head_pad], axis=0)

    # Vector slab: 6 rows per block + head bias row (+ sigmaB row if out_norm).
    rows = []
    for k in range(n_blocks):
        rows += [p['b'][k], p['gamma'][k], p['beta'][k], p['mean'][k], p['var'][k],
                 jnp.full((h_dim,), p['alpha'][k], jnp.float32)]
    rows.append(jnp.full((h_dim,), p['b_head'], jnp.float32))
    if out_norm:
        rows.append(jnp.full((h_dim,), p['sigmaB'], jnp.float32))
    v_slab = jnp.stack([r.reshape(h_dim) for r in rows], axis=0)
    return w_slab, v_slab


# ------------------------------ pure-JAX reference -----------------------------
def error_ref(x, p, out_norm=False):
    eps = 1e-5
    y = x
    for k in range(len(p['W'])):
        y = y @ p['W'][k] + p['b'][k]
        y = (y - p['mean'][k]) / jnp.sqrt(p['var'][k] + eps) * p['gamma'][k] + p['beta'][k]
        y = jnp.where(y >= 0, y, p['alpha'][k] * y)
    y = y @ p['W_head'] + p['b_head']
    if out_norm:
        y = jnp.tanh(y) * p['sigmaB']
    return y[0] if y.shape[0] == 1 else y


# ------------------------------------ main -------------------------------------
if __name__ == "__main__":
    key = jax.random.PRNGKey(0)
    kx, kp = jax.random.split(key)

    B, in_dim, h_dim, mlp_layer = 8, 32, 16, 1          # Error(in_dim=32) defaults
    n_blocks = 1 + mlp_layer
    x = jax.random.normal(kx, (B, in_dim), dtype=jnp.float32)
    params = init_params(kp, in_dim=in_dim, h_dim=h_dim, mlp_layer=mlp_layer)

    # Default path: out_norm=False
    w_slab, v_slab = pack_params(params, h_dim, out_norm=False)
    y = jax.block_until_ready(error_forward(
        x, w_slab, v_slab, in_dim=in_dim, h_dim=h_dim, n_blocks=n_blocks, out_norm=False))
    y_ref = jax.block_until_ready(error_ref(x, params, out_norm=False))
    assert y.shape == (B, 1), y.shape
    assert jnp.allclose(y, y_ref, rtol=1e-3, atol=1e-4), (y, y_ref)

    # out_norm=True path (tanh * sigmaB), also supported by the same kernel factory.
    w_slab_n, v_slab_n = pack_params(params, h_dim, out_norm=True)
    y2 = jax.block_until_ready(error_forward(
        x, w_slab_n, v_slab_n, in_dim=in_dim, h_dim=h_dim, n_blocks=n_blocks, out_norm=True))
    y2_ref = jax.block_until_ready(error_ref(x, params, out_norm=True))
    assert jnp.allclose(y2, y2_ref, rtol=1e-3, atol=1e-4), (y2, y2_ref)

    print("KERNEL_OK")
</pallas_src>

<mosaic_0001>
module attributes {stable_mosaic.version = 11 : i64} {
  func.func @kernel(%arg0: memref<8x32xf32, #tpu.memory_space<vmem>>, %arg1: memref<64x16xf32, #tpu.memory_space<vmem>>, %arg2: memref<13x16xf32, #tpu.memory_space<vmem>>, %arg3: memref<8x1xf32, #tpu.memory_space<vmem>>) attributes {dimension_semantics = [], scalar_prefetch = 0 : i64, scratch_operands = 0 : i64, tpu.core_type = #tpu.core_type<tc>} {
    %c0 = arith.constant 0 : index
    %c0_0 = arith.constant 0 : index
    %0 = vector.load %arg0[%c0, %c0_0] : memref<8x32xf32, #tpu.memory_space<vmem>>, vector<8x32xf32>
    %c0_1 = arith.constant 0 : index
    %c0_2 = arith.constant 0 : index
    %1 = vector.load %arg1[%c0_1, %c0_2] : memref<64x16xf32, #tpu.memory_space<vmem>>, vector<32x16xf32>
    %c0_3 = arith.constant 0 : index
    %c0_4 = arith.constant 0 : index
    %2 = vector.load %arg2[%c0_3, %c0_4] : memref<13x16xf32, #tpu.memory_space<vmem>>, vector<1x16xf32>
    %c1 = arith.constant 1 : index
    %c0_5 = arith.constant 0 : index
    %3 = vector.load %arg2[%c1, %c0_5] : memref<13x16xf32, #tpu.memory_space<vmem>>, vector<1x16xf32>
    %c2 = arith.constant 2 : index
    %c0_6 = arith.constant 0 : index
    %4 = vector.load %arg2[%c2, %c0_6] : memref<13x16xf32, #tpu.memory_space<vmem>>, vector<1x16xf32>
    %c3 = arith.constant 3 : index
    %c0_7 = arith.constant 0 : index
    %5 = vector.load %arg2[%c3, %c0_7] : memref<13x16xf32, #tpu.memory_space<vmem>>, vector<1x16xf32>
    %c4 = arith.constant 4 : index
    %c0_8 = arith.constant 0 : index
    %6 = vector.load %arg2[%c4, %c0_8] : memref<13x16xf32, #tpu.memory_space<vmem>>, vector<1x16xf32>
    %c5 = arith.constant 5 : index
    %c0_9 = arith.constant 0 : index
    %7 = vector.load %arg2[%c5, %c0_9] : memref<13x16xf32, #tpu.memory_space<vmem>>, vector<1x16xf32>
    %cst = arith.constant dense<0.000000e+00> : vector<8x16xf32>
    %8 = tpu.matmul %0, %1, %cst {dimension_numbers = #tpu.dot_dimension_numbers<[1], [0], [0], [1], [0, 0, 1, 1], [], []>} : vector<8x32xf32>, vector<32x16xf32>, vector<8x16xf32> -> vector<8x16xf32>
    %9 = vector.broadcast %2 : vector<1x16xf32> to vector<8x16xf32>
    %10 = arith.addf %8, %9 : vector<8x16xf32>
    %11 = vector.broadcast %5 : vector<1x16xf32> to vector<8x16xf32>
    %12 = arith.subf %10, %11 : vector<8x16xf32>
    %cst_10 = arith.constant 9.99999974E-6 : f32
    %13 = vector.broadcast %cst_10 : f32 to vector<1x16xf32>
    %14 = arith.addf %6, %13 : vector<1x16xf32>
    %15 = math.rsqrt %14 : vector<1x16xf32>
    %16 = arith.mulf %3, %15 : vector<1x16xf32>
    %17 = vector.broadcast %16 : vector<1x16xf32> to vector<8x16xf32>
    %18 = arith.mulf %12, %17 : vector<8x16xf32>
    %19 = vector.broadcast %4 : vector<1x16xf32> to vector<8x16xf32>
    %20 = arith.addf %18, %19 : vector<8x16xf32>
    %cst_11 = arith.constant 0.000000e+00 : f32
    %21 = vector.broadcast %cst_11 : f32 to vector<8x16xf32>
    %22 = arith.cmpf oge, %20, %21 : vector<8x16xf32>
    %23 = vector.broadcast %7 : vector<1x16xf32> to vector<8x16xf32>
    %24 = arith.mulf %23, %20 : vector<8x16xf32>
    %25 = arith.select %22, %20, %24 : vector<8x16xi1>, vector<8x16xf32>
    %c32 = arith.constant 32 : index
    %c0_12 = arith.constant 0 : index
    %26 = vector.load %arg1[%c32, %c0_12] : memref<64x16xf32, #tpu.memory_space<vmem>>, vector<16x16xf32>
    %c6 = arith.constant 6 : index
    %c0_13 = arith.constant 0 : index
    %27 = vector.load %arg2[%c6, %c0_13] : memref<13x16xf32, #tpu.memory_space<vmem>>, vector<1x16xf32>
    %c7 = arith.constant 7 : index
    %c0_14 = arith.constant 0 : index
    %28 = vector.load %arg2[%c7, %c0_14] : memref<13x16xf32, #tpu.memory_space<vmem>>, vector<1x16xf32>
    %c8 = arith.constant 8 : index
    %c0_15 = arith.constant 0 : index
    %29 = vector.load %arg2[%c8, %c0_15] : memref<13x16xf32, #tpu.memory_space<vmem>>, vector<1x16xf32>
    %c9 = arith.constant 9 : index
    %c0_16 = arith.constant 0 : index
    %30 = vector.load %arg2[%c9, %c0_16] : memref<13x16xf32, #tpu.memory_space<vmem>>, vector<1x16xf32>
    %c10 = arith.constant 10 : index
    %c0_17 = arith.constant 0 : index
    %31 = vector.load %arg2[%c10, %c0_17] : memref<13x16xf32, #tpu.memory_space<vmem>>, vector<1x16xf32>
    %c11 = arith.constant 11 : index
    %c0_18 = arith.constant 0 : index
    %32 = vector.load %arg2[%c11, %c0_18] : memref<13x16xf32, #tpu.memory_space<vmem>>, vector<1x16xf32>
    %cst_19 = arith.constant dense<0.000000e+00> : vector<8x16xf32>
    %33 = tpu.matmul %25, %26, %cst_19 {dimension_numbers = #tpu.dot_dimension_numbers<[1], [0], [0], [1], [0, 0, 1, 1], [], []>} : vector<8x16xf32>, vector<16x16xf32>, vector<8x16xf32> -> vector<8x16xf32>
    %34 = vector.broadcast %27 : vector<1x16xf32> to vector<8x16xf32>
    %35 = arith.addf %33, %34 : vector<8x16xf32>
    %36 = vector.broadcast %30 : vector<1x16xf32> to vector<8x16xf32>
    %37 = arith.subf %35, %36 : vector<8x16xf32>
    %cst_20 = arith.constant 9.99999974E-6 : f32
    %38 = vector.broadcast %cst_20 : f32 to vector<1x16xf32>
    %39 = arith.addf %31, %38 : vector<1x16xf32>
    %40 = math.rsqrt %39 : vector<1x16xf32>
    %41 = arith.mulf %28, %40 : vector<1x16xf32>
    %42 = vector.broadcast %41 : vector<1x16xf32> to vector<8x16xf32>
    %43 = arith.mulf %37, %42 : vector<8x16xf32>
    %44 = vector.broadcast %29 : vector<1x16xf32> to vector<8x16xf32>
    %45 = arith.addf %43, %44 : vector<8x16xf32>
    %cst_21 = arith.constant 0.000000e+00 : f32
    %46 = vector.broadcast %cst_21 : f32 to vector<8x16xf32>
    %47 = arith.cmpf oge, %45, %46 : vector<8x16xf32>
    %48 = vector.broadcast %32 : vector<1x16xf32> to vector<8x16xf32>
    %49 = arith.mulf %48, %45 : vector<8x16xf32>
    %50 = arith.select %47, %45, %49 : vector<8x16xi1>, vector<8x16xf32>
    %c48 = arith.constant 48 : index
    %c0_22 = arith.constant 0 : index
    %51 = vector.load %arg1[%c48, %c0_22] : memref<64x16xf32, #tpu.memory_space<vmem>>, vector<16x16xf32>
    %c12 = arith.constant 12 : index
    %c0_23 = arith.constant 0 : index
    %52 = vector.load %arg2[%c12, %c0_23] : memref<13x16xf32, #tpu.memory_space<vmem>>, vector<1x16xf32>
    %cst_24 = arith.constant dense<0.000000e+00> : vector<8x16xf32>
    %53 = tpu.matmul %50, %51, %cst_24 {dimension_numbers = #tpu.dot_dimension_numbers<[1], [0], [0], [1], [0, 0, 1, 1], [], []>} : vector<8x16xf32>, vector<16x16xf32>, vector<8x16xf32> -> vector<8x16xf32>
    %54 = vector.broadcast %52 : vector<1x16xf32> to vector<8x16xf32>
    %55 = arith.addf %53, %54 : vector<8x16xf32>
    %56 = vector.extract_strided_slice %55 {offsets = [0, 0], sizes = [8, 1], strides = [1, 1]} : vector<8x16xf32> to vector<8x1xf32>
    %c0_25 = arith.constant 0 : index
    %c0_26 = arith.constant 0 : index
    %57 = vector.load %arg3[%c0_25, %c0_26] : memref<8x1xf32, #tpu.memory_space<vmem>>, vector<8x1xf32>
    tpu.vector_store %arg3[%c0_25, %c0_26], %56 {strides = array<i32>} : memref<8x1xf32, #tpu.memory_space<vmem>>, vector<8x1xf32>,
    return
  }
}

</mosaic_0001>

<bundles_post_ra>
// kernel: error_forward.1
= control target key start
LH: loop header
LB: loop body
LE: loop exit
PB: predicated region body
PF: predicated region fallthrough
CT: control target
= control target key end

     0   :  { %v379_v0 = vmov 0.0   ;;  %vm380_vm0 = vmmov 0   ;;  %vm29_vm1 = vcmask 261120   ;;  %v111_v10 = vlaneseq  ;;  %s475_s1 = inlined_call_operand.vmem [shape: f32[64,16], index: 1, kind: input, shape index: {}]   ;;  %s476_s0 = inlined_call_operand.vmem [shape: f32[8,32], index: 0, kind: input, shape index: {}]   ;;  %s477_s2 = inlined_call_operand.vmem [shape: f32[13,16], index: 2, kind: input, shape index: {}]   ;;  %s478_s3 = inlined_call_operand.vmem [shape: f32[8,1], index: 3, kind: output, shape index: {}]  }
   0x1   :  { %348 = vmatprep.subr.mxu0 %v379_v0  ;;  %v18_v1 = vld [vmem:[%s475_s1 + $0x18] sm:$0xff]  ;;  %v17_v2 = vld [vmem:[%s475_s1 + $0x10] sm:$0xff]  ;;  %356 = vmatprep.mubr.msk.f32.mxu0 %vm380_vm0, %v379_v0  ;;  %v16_v3 = vld [vmem:[%s475_s1 + $0x8] sm:$0xff]  ;;  %vm140_vm3 = vcmask 130048   ;;  %vm319_vm5 = vcmask 7168  }
   0x2   :  { %349 = vmatpush3.msra.mxu0 %v18_v1  ;;  %359 = vmatprep.subr.mxu1 %v379_v0  ;;  %v15_v4 = vld [vmem:[%s475_s1] sm:$0xff]  ;;  %v129_v6 = vld [vmem:[%s475_s1 + $0x28] sm:$0xff]  ;;  %v112_v11 = vshrl.u32 %v111_v10, 7  ;;  %v240_v29 = vld [vmem:[%s475_s1 + $0x38] sm:$0xff] }
   0x3   :  { %350 = vmatprep.subr.mxu0 %v379_v0  ;;  %363 = vmatprep.mubr.msk.f32.mxu1 %vm380_vm0, %v379_v0  ;;  %v14_v5 = vld [vmem:[%s476_s0] sm:$0xff]  ;;  %v239_v30 = vld [vmem:[%s475_s1 + $0x30] sm:$0xff]  ;;  %v134_v31 = vld [vmem:[%s477_s2 + $0xa] sm:$0x1] }
   0x4   :  { %351 = vmatpush3.msra.mxu0 %v17_v2  ;;  %v128_v7 = vld [vmem:[%s475_s1 + $0x20] sm:$0xff]  ;;  %360 = vmatpush3.msra.mxu1 %v129_v6  ;;  %v113_v15 = vsub.s32 0, %v112_v11  ;;  %v219_v32 = vadd.f32 1e-05, %v134_v31  ;;  %v332_v37 = vld [vmem:[%s477_s2 + $0x9] ss:$0 sm:$0xff] }
   0x5   :  { %352 = vmatprep.subr.mxu0 %v379_v0  ;;  %361 = vmatprep.subr.mxu1 %v379_v0  ;;  %v23_v8 = vld [vmem:[%s477_s2 + $0x4] sm:$0x1]  ;;  %v20_v13 = vld [vmem:[%s477_s2 + $0x1] sm:$0x1]  ;;  %v325_v16 = vld [vmem:[%s477_s2] ss:$0 sm:$0xff] }
   0x6   :  { %353 = vmatpush3.msra.mxu0 %v16_v3  ;;  %362 = vmatpush3.msra.mxu1 %v128_v7  ;;  %v108_v9 = vadd.f32 1e-05, %v23_v8  ;;  %v327_v17 = vld [vmem:[%s477_s2 + $0x3] ss:$0 sm:$0xff]  ;;  %v328_v23 = vld [vmem:[%s477_s2 + $0x2] ss:$0 sm:$0xff] }
   0x7   :  { %354 = vmatprep.subr.mxu0 %v379_v0  ;;  %366 = vmatprep.subr.mxu1 %v379_v0  ;;  %v329_v25 = vld [vmem:[%s477_s2 + $0x5] ss:$0 sm:$0xff]  ;;  %v131_v34 = vld [vmem:[%s477_s2 + $0x7] sm:$0x1]  ;;  %v330_v36 = vld [vmem:[%s477_s2 + $0x6] ss:$0 sm:$0xff] }
   0x8   :  { %355 = vmatpush3.msra.mxu0 %v15_v4  ;;  %375 = vrsqrt.f32 %v108_v9  ;;  %v333_v43 = vld [vmem:[%s477_s2 + $0x8] ss:$0 sm:$0xff]  ;;  %v334_v45 = vld [vmem:[%s477_s2 + $0xb] ss:$0 sm:$0xff]  ;;  %v335_v49 = vld [vmem:[%s477_s2 + $0xc] ss:$0 sm:$0xff] }
   0x9   :  { %357 = vmatmul.mubr.msk.f32.vlgmr.msra.gmra.mxu0 %vm29_vm1, %v14_v5  ;;  %377 = vrsqrt.f32 %v219_v32 }
  0x15   :  { %v376_v12 = vpop.eup %375 }
  0x16   :  { %v110_v14 = vmul.f32 %v376_v12, %v20_v13  ;;  %v378_v33 = vpop.eup %377 }
  0x17   :  { %v221_v35 = vmul.f32 %v378_v33, %v131_v34 }
  0x18   :  { %v114_v20 = vrot.slane %v110_v14, %v113_v15 }
  0x19   :  { %v225_v40 = vrot.slane %v221_v35, %v113_v15 }
  0xc9   :  { %v99_v18 = vpop.f32.mrf.mxu0 }
  0xca   :  { %v100_v19 = vadd.f32 %v325_v16, %v99_v18 }
  0xcb   :  { %v358_v21 = vpop.f32.mrf.mxu0 }
  0xcc   :  { %v107_v22 = vsub.f32 %v100_v19, %v327_v17 }
  0xce   :  { %v115_v24 = vmul.f32 %v114_v20, %v107_v22 }
  0xd0   :  { %v120_v26 = vadd.f32 %v328_v23, %v115_v24 }
  0xd2   :  { %vm121_vm2 = vcmp.ge.f32.partialorder %v120_v26, 0.0  ;;  %v126_v27 = vmul.f32 %v329_v25, %v120_v26 }
  0xd4   :  { %v127_v28 = vsel %vm121_vm2, %v120_v26, %v126_v27 }
  0xd5   :  { %364 = vmatmul.mubr.msk.f32.vlgmr.msra.gmra.mxu1 %vm140_vm3, %v127_v28 }
  0xd6   :  { %370 = vmatprep.mubr.msk.f32.mxu1 %vm380_vm0, %v379_v0  ;;  %367 = vmatpush3.msra.mxu1 %v240_v29 }
  0xd7   :  { %368 = vmatprep.subr.mxu1 %v379_v0 }
  0xd8   :  { %369 = vmatpush3.msra.mxu1 %v239_v30 }
 0x195   :  { %v210_v38 = vpop.f32.mrf.mxu1 }
 0x196   :  { %v211_v39 = vadd.f32 %v330_v36, %v210_v38 }
 0x197   :  { %v365_v41 = vpop.f32.mrf.mxu1 }
 0x198   :  { %v218_v42 = vsub.f32 %v211_v39, %v332_v37 }
 0x19a   :  { %v226_v44 = vmul.f32 %v225_v40, %v218_v42 }
 0x19c   :  { %v231_v46 = vadd.f32 %v333_v43, %v226_v44 }
 0x19e   :  { %vm232_vm4 = vcmp.ge.f32.partialorder %v231_v46, 0.0  ;;  %v237_v47 = vmul.f32 %v334_v45, %v231_v46 }
 0x1a0   :  { %v238_v48 = vsel %vm232_vm4, %v231_v46, %v237_v47 }
 0x1a1   :  { %371 = vmatmul.mubr.msk.f32.vlgmr.msra.gmra.mxu1 %vm140_vm3, %v238_v48 }
 0x261   :  { %v315_v50 = vpop.f32.mrf.mxu1 }
 0x262   :  { %v316_v51 = vadd.f32 %v335_v49, %v315_v50 }
 0x263   :  { %v372_v52 = vpop.f32.mrf.mxu1 }
 0x264   :  { %320 = vst.msk [vmem:[%s478_s3] sm:$0xff] %vm319_vm5, %v316_v51 }

</bundles_post_ra>
